<compile_context>
chip_gen: v7x
topology: tpu7x:2x2x1
jax: 0.10.0
libtpu: 0.0.40
codegen_flags: <defaults>
</compile_context>

<pallas_src>
import functools

import jax
import jax.numpy as jnp
from jax.experimental import pallas as pl
from jax.experimental.pallas import tpu as pltpu

_LANES = 128
_SUBLANES = 8
_VREG_PIXELS = _SUBLANES * _LANES      # 1024 pixels per full (8,128) f32 vreg
_MAX_TILE = 131072                     # pixels per grid step (multiple of 1024)


def _round_up(x, m):
    return ((x + m - 1) // m) * m


def _cdiv(a, b):
    return (a + b - 1) // b


def _combined_loss_kernel(logits_ref, tgt_ref,
                          o_inter, o_psum, o_tsum, o_ce,
                          *, hw, tile, nt_split, mask_start_tile, has_pad):
    """In-kernel shapes:
         logits_ref : (C, S, 128) float   (S = tile // 128, multiple of 8)
         tgt_ref    : (1, S, 128) int32
         o_inter/o_psum/o_tsum : (C, 8, 128) f32 output-resident accumulators
         o_ce       : (1, 8, 128) f32 output-resident accumulator
    """
    t = pl.program_id(2)
    gt = pl.program_id(0) * nt_split + t        # global pixel-tile index

    @pl.when(t == 0)
    def _():
        o_inter[...] = jnp.zeros_like(o_inter)
        o_psum[...] = jnp.zeros_like(o_psum)
        o_tsum[...] = jnp.zeros_like(o_tsum)
        o_ce[...] = jnp.zeros_like(o_ce)

    logits = logits_ref[...].astype(jnp.float32)   # (C, S, 128)
    tgt = tgt_ref[...]                             # (1, S, 128) int32
    num_classes, s_rows, lanes = logits.shape

    def grp_sum(x):
        # (..., S, 128) -> (..., 8, 128): tree-sum over vreg groups, pure VALU.
        g = s_rows // _SUBLANES
        return jnp.sum(x.reshape(x.shape[:-2] + (g, _SUBLANES, lanes)), axis=-3)

    def update(mask):
        # Stable softmax along the leading (untiled) class axis: elementwise only.
        m = jnp.max(logits, axis=0)                    # (S, 128)
        z = logits - m                                 # (C, S, 128)
        ez = jnp.exp(z)
        denom = jnp.sum(ez, axis=0)                    # (S, 128)
        inv = pl.reciprocal(denom, approx=True)        # EUP slot, VALU-free
        logden = jnp.log(denom)

        cls_ids = jax.lax.broadcasted_iota(
            jnp.int32, (num_classes, s_rows, lanes), 0)
        onehot = (tgt == cls_ids).astype(jnp.float32)  # (C, S, 128)

        if mask is not None:              # (S,128) pixel-validity (padded tile)
            inv = inv * mask              # masks softmax -> psum & intersection
            logden = logden * mask        # masks CE log-denominator
            onehot = onehot * mask        # masks tsum / intersection / picked z

        p = ez * inv                                   # (C, S, 128) softmax
        ce = logden - jnp.sum(onehot * z, axis=0)      # (S, 128)

        o_inter[...] += grp_sum(p * onehot)
        o_psum[...] += grp_sum(p)
        o_tsum[...] += grp_sum(onehot)
        o_ce[...] += grp_sum(ce)[None]

    if has_pad:
        @pl.when(gt < mask_start_tile)
        def _():
            update(None)                               # unmasked fast path

        @pl.when(gt >= mask_start_tile)
        def _():                                       # tile contains padding
            sub = jax.lax.broadcasted_iota(jnp.int32, (s_rows, lanes), 0)
            lane = jax.lax.broadcasted_iota(jnp.int32, (s_rows, lanes), 1)
            pix = gt * tile + sub * lanes + lane
            update((pix < hw).astype(jnp.float32))
    else:
        update(None)


@functools.partial(jax.jit, static_argnames=("alpha", "num_classes", "smooth"))
def combined_loss(pred, target, alpha=0.5, num_classes=3, smooth=1.0):
    """pred: (N, C, H, W) float logits; target: (N, H, W) int class ids."""
    N, C, H, W = pred.shape
    assert C == num_classes
    HW = H * W

    # ---- tiling: pick the largest pixel tile (multiple of 1024) <= _MAX_TILE
    hw_pad0 = _round_up(HW, _VREG_PIXELS)
    nt_guess = max(1, _cdiv(hw_pad0, _MAX_TILE))
    tile = _round_up(_cdiv(hw_pad0, nt_guess), _VREG_PIXELS)   # <= _MAX_TILE
    nt = _cdiv(HW, tile)

    # v7x has 2 TensorCores: if the batch alone cannot feed both, split the
    # pixel-tile axis into 2 parallel halves producing independent partials.
    splits = 2 if (N == 1 and nt >= 2) else 1
    if nt % splits != 0:
        nt += 1                       # one extra fully-masked dummy tile
    nt_split = nt // splits
    hw_pad = nt * tile

    logits = pred.reshape(N, C, HW)
    tgt = target.reshape(N, 1, HW).astype(jnp.int32)
    # TODO(synk): stream target as int8 (and logits as bf16 when the producer
    # emits bf16) to cut HBM traffic on bandwidth-poor v5e.
    if hw_pad != HW:
        logits = jnp.pad(logits, ((0, 0), (0, 0), (0, hw_pad - HW)))
        tgt = jnp.pad(tgt, ((0, 0), (0, 0), (0, hw_pad - HW)))
    s_total = hw_pad // _LANES
    s_tile = tile // _LANES
    logits = logits.reshape(N, C, s_total, _LANES)   # free reshape
    tgt = tgt.reshape(N, 1, s_total, _LANES)         # free reshape

    kernel = functools.partial(
        _combined_loss_kernel, hw=HW, tile=tile, nt_split=nt_split,
        mask_start_tile=HW // tile, has_pad=(hw_pad != HW))

    acc_spec = pl.BlockSpec((None, C, _SUBLANES, _LANES),
                            lambda s, n, t: (s * N + n, 0, 0, 0))
    ce_spec = pl.BlockSpec((None, 1, _SUBLANES, _LANES),
                           lambda s, n, t: (s * N + n, 0, 0, 0))

    inter, psum, tsum, ce = pl.pallas_call(
        kernel,
        out_shape=(
            jax.ShapeDtypeStruct((splits * N, C, _SUBLANES, _LANES), jnp.float32),
            jax.ShapeDtypeStruct((splits * N, C, _SUBLANES, _LANES), jnp.float32),
            jax.ShapeDtypeStruct((splits * N, C, _SUBLANES, _LANES), jnp.float32),
            jax.ShapeDtypeStruct((splits * N, 1, _SUBLANES, _LANES), jnp.float32),
        ),
        grid_spec=pltpu.PrefetchScalarGridSpec(
            num_scalar_prefetch=0,
            grid=(splits, N, nt_split),
            in_specs=[
                pl.BlockSpec((None, C, s_tile, _LANES),
                             lambda s, n, t: (n, 0, s * nt_split + t, 0)),
                pl.BlockSpec((None, 1, s_tile, _LANES),
                             lambda s, n, t: (n, 0, s * nt_split + t, 0)),
            ],
            out_specs=[acc_spec, acc_spec, acc_spec, ce_spec],
        ),
        compiler_params=pltpu.CompilerParams(
            dimension_semantics=("parallel", "parallel", "arbitrary"),
            # ~4 MiB pipeline buffers + in-body temporaries; 32 MiB leaves
            # headroom on v7x (64 MiB physical) and matches the v6e default.
            vmem_limit_bytes=32 * 1024 * 1024,
        ),
    )(logits, tgt)

    # Tiny final combination in plain JAX glue.
    inter = jnp.sum(inter, axis=(0, 2, 3))            # (C,)
    psum = jnp.sum(psum, axis=(0, 2, 3))              # (C,)
    tsum = jnp.sum(tsum, axis=(0, 2, 3))              # (C,)
    ce_sum = jnp.sum(ce)

    ce_loss = ce_sum / jnp.float32(N * HW)            # nn.CrossEntropyLoss (mean)
    dice = (2.0 * inter + smooth) / (psum + tsum + smooth)
    dice_loss = jnp.sum(1.0 - dice) / jnp.float32(num_classes)
    return alpha * ce_loss + (1.0 - alpha) * dice_loss


def _reference_loss(pred, target, alpha=0.5, num_classes=3, smooth=1.0):
    """Pure-JAX reference mirroring the PyTorch module."""
    logits = jnp.transpose(pred, (0, 2, 3, 1)).reshape(-1, num_classes)
    tgt = target.reshape(-1)
    logp = jax.nn.log_softmax(logits, axis=-1)
    ce = -jnp.mean(jnp.take_along_axis(logp, tgt[:, None], axis=1))
    p = jax.nn.softmax(logits, axis=-1)
    total = 0.0
    for c in range(num_classes):
        pc = p[:, c]
        tc = (tgt == c).astype(jnp.float32)
        inter = jnp.sum(pc * tc)
        union = jnp.sum(pc) + jnp.sum(tc)
        total += 1.0 - (2.0 * inter + smooth) / (union + smooth)
    dice = total / num_classes
    return alpha * ce + (1.0 - alpha) * dice


if __name__ == "__main__":
    key = jax.random.PRNGKey(0)
    k1, k2, k3, k4 = jax.random.split(key, 4)
    N, C = 2, 3

    # Case 1: HW = 256 (< one 1024-pixel vreg group) -> exercises masked path.
    H = W = 16
    pred = jax.random.normal(k1, (N, C, H, W), dtype=jnp.float32)
    target = jax.random.randint(k2, (N, H, W), 0, C, dtype=jnp.int32)
    loss = jax.block_until_ready(combined_loss(pred, target, alpha=0.5, num_classes=C))
    ref = _reference_loss(pred, target, alpha=0.5, num_classes=C)
    assert jnp.allclose(loss, ref, rtol=2e-3, atol=1e-3), (loss, ref)

    # Case 2: HW = 1024 (exact vreg-group multiple) -> exercises unmasked fast path.
    H2 = W2 = 32
    pred2 = jax.random.normal(k3, (N, C, H2, W2), dtype=jnp.float32)
    target2 = jax.random.randint(k4, (N, H2, W2), 0, C, dtype=jnp.int32)
    loss2 = jax.block_until_ready(combined_loss(pred2, target2, alpha=0.5, num_classes=C))
    ref2 = _reference_loss(pred2, target2, alpha=0.5, num_classes=C)
    assert jnp.allclose(loss2, ref2, rtol=2e-3, atol=1e-3), (loss2, ref2)

    print("KERNEL_OK")
</pallas_src>

<mosaic_0001>
module attributes {stable_mosaic.version = 11 : i64} {
  func.func @_combined_loss_kernel(%arg0: i32, %arg1: i32, %arg2: i32, %arg3: memref<1x3x8x128xf32, #tpu.memory_space<vmem>>, %arg4: memref<1x1x8x128xi32, #tpu.memory_space<vmem>>, %arg5: memref<1x3x8x128xf32, #tpu.memory_space<vmem>>, %arg6: memref<1x3x8x128xf32, #tpu.memory_space<vmem>>, %arg7: memref<1x3x8x128xf32, #tpu.memory_space<vmem>>, %arg8: memref<1x1x8x128xf32, #tpu.memory_space<vmem>>) attributes {dimension_semantics = [#tpu.dimension_semantics<parallel>, #tpu.dimension_semantics<parallel>, #tpu.dimension_semantics<arbitrary>], iteration_bounds = array<i64: 1, 2, 1>, scalar_prefetch = 0 : i64, scratch_operands = 0 : i64, tpu.core_type = #tpu.core_type<tc>, window_params = [{transform_indices = @transform_0, window_bounds = array<i64: 1, 3, 8, 128>}, {transform_indices = @transform_1, window_bounds = array<i64: 1, 1, 8, 128>}, {transform_indices = @transform_2, window_bounds = array<i64: 1, 3, 8, 128>}, {transform_indices = @transform_3, window_bounds = array<i64: 1, 3, 8, 128>}, {transform_indices = @transform_4, window_bounds = array<i64: 1, 3, 8, 128>}, {transform_indices = @transform_5, window_bounds = array<i64: 1, 1, 8, 128>}]} {
    %c1_i32 = arith.constant 1 : i32
    %0 = arith.muli %arg0, %c1_i32 : i32
    %1 = arith.addi %0, %arg2 : i32
    %c0_i32 = arith.constant 0 : i32
    %2 = arith.cmpi eq, %arg2, %c0_i32 : i32
    %3 = arith.extui %2 : i1 to i32
    %c0_i32_0 = arith.constant 0 : i32
    %4 = arith.cmpi ne, %3, %c0_i32_0 : i32
    scf.if %4 {
      %cst = arith.constant 0.000000e+00 : f32
      %15 = vector.broadcast %cst : f32 to vector<3x8x128xf32>
      %c0_12 = arith.constant 0 : index
      %c0_13 = arith.constant 0 : index
      %c0_14 = arith.constant 0 : index
      %c0_15 = arith.constant 0 : index
      %16 = vector.load %arg5[%c0_12, %c0_13, %c0_14, %c0_15] : memref<1x3x8x128xf32, #tpu.memory_space<vmem>>, vector<1x3x8x128xf32>
      %17 = vector.shape_cast %16 : vector<1x3x8x128xf32> to vector<3x8x128xf32>
      %18 = vector.shape_cast %15 : vector<3x8x128xf32> to vector<1x3x8x128xf32>
      tpu.vector_store %arg5[%c0_12, %c0_13, %c0_14, %c0_15], %18 {strides = array<i32>} : memref<1x3x8x128xf32, #tpu.memory_space<vmem>>, vector<1x3x8x128xf32>,
      %cst_16 = arith.constant 0.000000e+00 : f32
      %19 = vector.broadcast %cst_16 : f32 to vector<3x8x128xf32>
      %c0_17 = arith.constant 0 : index
      %c0_18 = arith.constant 0 : index
      %c0_19 = arith.constant 0 : index
      %c0_20 = arith.constant 0 : index
      %20 = vector.load %arg6[%c0_17, %c0_18, %c0_19, %c0_20] : memref<1x3x8x128xf32, #tpu.memory_space<vmem>>, vector<1x3x8x128xf32>
      %21 = vector.shape_cast %20 : vector<1x3x8x128xf32> to vector<3x8x128xf32>
      %22 = vector.shape_cast %19 : vector<3x8x128xf32> to vector<1x3x8x128xf32>
      tpu.vector_store %arg6[%c0_17, %c0_18, %c0_19, %c0_20], %22 {strides = array<i32>} : memref<1x3x8x128xf32, #tpu.memory_space<vmem>>, vector<1x3x8x128xf32>,
      %cst_21 = arith.constant 0.000000e+00 : f32
      %23 = vector.broadcast %cst_21 : f32 to vector<3x8x128xf32>
      %c0_22 = arith.constant 0 : index
      %c0_23 = arith.constant 0 : index
      %c0_24 = arith.constant 0 : index
      %c0_25 = arith.constant 0 : index
      %24 = vector.load %arg7[%c0_22, %c0_23, %c0_24, %c0_25] : memref<1x3x8x128xf32, #tpu.memory_space<vmem>>, vector<1x3x8x128xf32>
      %25 = vector.shape_cast %24 : vector<1x3x8x128xf32> to vector<3x8x128xf32>
      %26 = vector.shape_cast %23 : vector<3x8x128xf32> to vector<1x3x8x128xf32>
      tpu.vector_store %arg7[%c0_22, %c0_23, %c0_24, %c0_25], %26 {strides = array<i32>} : memref<1x3x8x128xf32, #tpu.memory_space<vmem>>, vector<1x3x8x128xf32>,
      %cst_26 = arith.constant 0.000000e+00 : f32
      %27 = vector.broadcast %cst_26 : f32 to vector<1x8x128xf32>
      %c0_27 = arith.constant 0 : index
      %c0_28 = arith.constant 0 : index
      %c0_29 = arith.constant 0 : index
      %c0_30 = arith.constant 0 : index
      %28 = vector.load %arg8[%c0_27, %c0_28, %c0_29, %c0_30] : memref<1x1x8x128xf32, #tpu.memory_space<vmem>>, vector<1x1x8x128xf32>
      %29 = vector.shape_cast %28 : vector<1x1x8x128xf32> to vector<1x8x128xf32>
      %30 = vector.shape_cast %27 : vector<1x8x128xf32> to vector<1x1x8x128xf32>
      tpu.vector_store %arg8[%c0_27, %c0_28, %c0_29, %c0_30], %30 {strides = array<i32>} : memref<1x1x8x128xf32, #tpu.memory_space<vmem>>, vector<1x1x8x128xf32>,
    } else {
    }
    %c0 = arith.constant 0 : index
    %c0_1 = arith.constant 0 : index
    %c0_2 = arith.constant 0 : index
    %c0_3 = arith.constant 0 : index
    %5 = vector.load %arg3[%c0, %c0_1, %c0_2, %c0_3] : memref<1x3x8x128xf32, #tpu.memory_space<vmem>>, vector<1x3x8x128xf32>
    %6 = vector.shape_cast %5 : vector<1x3x8x128xf32> to vector<3x8x128xf32>
    %c0_4 = arith.constant 0 : index
    %c0_5 = arith.constant 0 : index
    %c0_6 = arith.constant 0 : index
    %c0_7 = arith.constant 0 : index
    %7 = vector.load %arg4[%c0_4, %c0_5, %c0_6, %c0_7] : memref<1x1x8x128xi32, #tpu.memory_space<vmem>>, vector<1x1x8x128xi32>
    %8 = vector.shape_cast %7 : vector<1x1x8x128xi32> to vector<1x8x128xi32>
    %c0_i32_8 = arith.constant 0 : i32
    %9 = arith.cmpi slt, %1, %c0_i32_8 : i32
    %10 = arith.extui %9 : i1 to i32
    %c0_i32_9 = arith.constant 0 : i32
    %11 = arith.cmpi ne, %10, %c0_i32_9 : i32
    scf.if %11 {
      %cst = arith.constant dense<0xFF800000> : vector<8x128xf32>
      %15 = vector.multi_reduction <maximumf>, %6, %cst [0] : vector<3x8x128xf32> to vector<8x128xf32>
      %16 = vector.shape_cast %15 : vector<8x128xf32> to vector<1x8x128xf32>
      %17 = vector.broadcast %16 : vector<1x8x128xf32> to vector<3x8x128xf32>
      %18 = arith.subf %6, %17 : vector<3x8x128xf32>
      %19 = math.exp %18 : vector<3x8x128xf32>
      %cst_12 = arith.constant dense<0.000000e+00> : vector<8x128xf32>
      %20 = vector.multi_reduction <add>, %19, %cst_12 [0] : vector<3x8x128xf32> to vector<8x128xf32>
      %21 = tpu.reciprocal %20 {approx = true} : vector<8x128xf32> -> vector<8x128xf32>
      %22 = math.log %20 : vector<8x128xf32>
      %23 = tpu.iota {dimensions = array<i32: 0>} : vector<3x8x128xi32>
      %24 = vector.broadcast %8 : vector<1x8x128xi32> to vector<3x8x128xi32>
      %25 = arith.cmpi eq, %24, %23 : vector<3x8x128xi32>
      %26 = arith.extui %25 : vector<3x8x128xi1> to vector<3x8x128xi32>
      %27 = arith.sitofp %26 : vector<3x8x128xi32> to vector<3x8x128xf32>
      %28 = vector.shape_cast %21 : vector<8x128xf32> to vector<1x8x128xf32>
      %29 = vector.broadcast %28 : vector<1x8x128xf32> to vector<3x8x128xf32>
      %30 = arith.mulf %19, %29 : vector<3x8x128xf32>
      %31 = arith.mulf %27, %18 : vector<3x8x128xf32>
      %cst_13 = arith.constant dense<0.000000e+00> : vector<8x128xf32>
      %32 = vector.multi_reduction <add>, %31, %cst_13 [0] : vector<3x8x128xf32> to vector<8x128xf32>
      %33 = arith.subf %22, %32 : vector<8x128xf32>
      %c0_14 = arith.constant 0 : index
      %c0_15 = arith.constant 0 : index
      %c0_16 = arith.constant 0 : index
      %c0_17 = arith.constant 0 : index
      %34 = vector.load %arg5[%c0_14, %c0_15, %c0_16, %c0_17] : memref<1x3x8x128xf32, #tpu.memory_space<vmem>>, vector<1x3x8x128xf32>
      %35 = vector.shape_cast %34 : vector<1x3x8x128xf32> to vector<3x8x128xf32>
      %36 = arith.mulf %30, %27 : vector<3x8x128xf32>
      %37 = vector.shape_cast %36 : vector<3x8x128xf32> to vector<3x1x8x128xf32>
      %cst_18 = arith.constant dense<0.000000e+00> : vector<3x8x128xf32>
      %38 = vector.multi_reduction <add>, %37, %cst_18 [1] : vector<3x1x8x128xf32> to vector<3x8x128xf32>
      %39 = arith.addf %35, %38 : vector<3x8x128xf32>
      %c0_19 = arith.constant 0 : index
      %c0_20 = arith.constant 0 : index
      %c0_21 = arith.constant 0 : index
      %c0_22 = arith.constant 0 : index
      %40 = vector.load %arg5[%c0_19, %c0_20, %c0_21, %c0_22] : memref<1x3x8x128xf32, #tpu.memory_space<vmem>>, vector<1x3x8x128xf32>
      %41 = vector.shape_cast %40 : vector<1x3x8x128xf32> to vector<3x8x128xf32>
      %42 = vector.shape_cast %39 : vector<3x8x128xf32> to vector<1x3x8x128xf32>
      tpu.vector_store %arg5[%c0_19, %c0_20, %c0_21, %c0_22], %42 {strides = array<i32>} : memref<1x3x8x128xf32, #tpu.memory_space<vmem>>, vector<1x3x8x128xf32>,
      %c0_23 = arith.constant 0 : index
      %c0_24 = arith.constant 0 : index
      %c0_25 = arith.constant 0 : index
      %c0_26 = arith.constant 0 : index
      %43 = vector.load %arg6[%c0_23, %c0_24, %c0_25, %c0_26] : memref<1x3x8x128xf32, #tpu.memory_space<vmem>>, vector<1x3x8x128xf32>
      %44 = vector.shape_cast %43 : vector<1x3x8x128xf32> to vector<3x8x128xf32>
      %45 = vector.shape_cast %30 : vector<3x8x128xf32> to vector<3x1x8x128xf32>
      %cst_27 = arith.constant dense<0.000000e+00> : vector<3x8x128xf32>
      %46 = vector.multi_reduction <add>, %45, %cst_27 [1] : vector<3x1x8x128xf32> to vector<3x8x128xf32>
      %47 = arith.addf %44, %46 : vector<3x8x128xf32>
      %c0_28 = arith.constant 0 : index
      %c0_29 = arith.constant 0 : index
      %c0_30 = arith.constant 0 : index
      %c0_31 = arith.constant 0 : index
      %48 = vector.load %arg6[%c0_28, %c0_29, %c0_30, %c0_31] : memref<1x3x8x128xf32, #tpu.memory_space<vmem>>, vector<1x3x8x128xf32>
      %49 = vector.shape_cast %48 : vector<1x3x8x128xf32> to vector<3x8x128xf32>
      %50 = vector.shape_cast %47 : vector<3x8x128xf32> to vector<1x3x8x128xf32>
      tpu.vector_store %arg6[%c0_28, %c0_29, %c0_30, %c0_31], %50 {strides = array<i32>} : memref<1x3x8x128xf32, #tpu.memory_space<vmem>>, vector<1x3x8x128xf32>,
      %c0_32 = arith.constant 0 : index
      %c0_33 = arith.constant 0 : index
      %c0_34 = arith.constant 0 : index
      %c0_35 = arith.constant 0 : index
      %51 = vector.load %arg7[%c0_32, %c0_33, %c0_34, %c0_35] : memref<1x3x8x128xf32, #tpu.memory_space<vmem>>, vector<1x3x8x128xf32>
      %52 = vector.shape_cast %51 : vector<1x3x8x128xf32> to vector<3x8x128xf32>
      %53 = vector.shape_cast %27 : vector<3x8x128xf32> to vector<3x1x8x128xf32>
      %cst_36 = arith.constant dense<0.000000e+00> : vector<3x8x128xf32>
      %54 = vector.multi_reduction <add>, %53, %cst_36 [1] : vector<3x1x8x128xf32> to vector<3x8x128xf32>
      %55 = arith.addf %52, %54 : vector<3x8x128xf32>
      %c0_37 = arith.constant 0 : index
      %c0_38 = arith.constant 0 : index
      %c0_39 = arith.constant 0 : index
      %c0_40 = arith.constant 0 : index
      %56 = vector.load %arg7[%c0_37, %c0_38, %c0_39, %c0_40] : memref<1x3x8x128xf32, #tpu.memory_space<vmem>>, vector<1x3x8x128xf32>
      %57 = vector.shape_cast %56 : vector<1x3x8x128xf32> to vector<3x8x128xf32>
      %58 = vector.shape_cast %55 : vector<3x8x128xf32> to vector<1x3x8x128xf32>
      tpu.vector_store %arg7[%c0_37, %c0_38, %c0_39, %c0_40], %58 {strides = array<i32>} : memref<1x3x8x128xf32, #tpu.memory_space<vmem>>, vector<1x3x8x128xf32>,
      %c0_41 = arith.constant 0 : index
      %c0_42 = arith.constant 0 : index
      %c0_43 = arith.constant 0 : index
      %c0_44 = arith.constant 0 : index
      %59 = vector.load %arg8[%c0_41, %c0_42, %c0_43, %c0_44] : memref<1x1x8x128xf32, #tpu.memory_space<vmem>>, vector<1x1x8x128xf32>
      %60 = vector.shape_cast %59 : vector<1x1x8x128xf32> to vector<1x8x128xf32>
      %61 = vector.shape_cast %33 : vector<8x128xf32> to vector<1x8x128xf32>
      %cst_45 = arith.constant dense<0.000000e+00> : vector<8x128xf32>
      %62 = vector.multi_reduction <add>, %61, %cst_45 [0] : vector<1x8x128xf32> to vector<8x128xf32>
      %63 = vector.shape_cast %62 : vector<8x128xf32> to vector<1x8x128xf32>
      %64 = arith.addf %60, %63 : vector<1x8x128xf32>
      %c0_46 = arith.constant 0 : index
      %c0_47 = arith.constant 0 : index
      %c0_48 = arith.constant 0 : index
      %c0_49 = arith.constant 0 : index
      %65 = vector.load %arg8[%c0_46, %c0_47, %c0_48, %c0_49] : memref<1x1x8x128xf32, #tpu.memory_space<vmem>>, vector<1x1x8x128xf32>
      %66 = vector.shape_cast %65 : vector<1x1x8x128xf32> to vector<1x8x128xf32>
      %67 = vector.shape_cast %64 : vector<1x8x128xf32> to vector<1x1x8x128xf32>
      tpu.vector_store %arg8[%c0_46, %c0_47, %c0_48, %c0_49], %67 {strides = array<i32>} : memref<1x1x8x128xf32, #tpu.memory_space<vmem>>, vector<1x1x8x128xf32>,
    } else {
    }
    %c0_i32_10 = arith.constant 0 : i32
    %12 = arith.cmpi sge, %1, %c0_i32_10 : i32
    %13 = arith.extui %12 : i1 to i32
    %c0_i32_11 = arith.constant 0 : i32
    %14 = arith.cmpi ne, %13, %c0_i32_11 : i32
    scf.if %14 {
      %15 = tpu.iota {dimensions = array<i32: 0>} : vector<8x128xi32>
      %16 = tpu.iota {dimensions = array<i32: 1>} : vector<8x128xi32>
      %c1024_i32 = arith.constant 1024 : i32
      %17 = arith.muli %1, %c1024_i32 : i32
      %c128_i32 = arith.constant 128 : i32
      %18 = vector.broadcast %c128_i32 : i32 to vector<8x128xi32>
      %19 = arith.muli %15, %18 : vector<8x128xi32>
      %20 = vector.broadcast %17 : i32 to vector<8x128xi32>
      %21 = arith.addi %20, %19 : vector<8x128xi32>
      %22 = arith.addi %21, %16 : vector<8x128xi32>
      %c256_i32 = arith.constant 256 : i32
      %23 = vector.broadcast %c256_i32 : i32 to vector<8x128xi32>
      %24 = arith.cmpi slt, %22, %23 : vector<8x128xi32>
      %25 = arith.extui %24 : vector<8x128xi1> to vector<8x128xi32>
      %26 = arith.sitofp %25 : vector<8x128xi32> to vector<8x128xf32>
      %cst = arith.constant dense<0xFF800000> : vector<8x128xf32>
      %27 = vector.multi_reduction <maximumf>, %6, %cst [0] : vector<3x8x128xf32> to vector<8x128xf32>
      %28 = vector.shape_cast %27 : vector<8x128xf32> to vector<1x8x128xf32>
      %29 = vector.broadcast %28 : vector<1x8x128xf32> to vector<3x8x128xf32>
      %30 = arith.subf %6, %29 : vector<3x8x128xf32>
      %31 = math.exp %30 : vector<3x8x128xf32>
      %cst_12 = arith.constant dense<0.000000e+00> : vector<8x128xf32>
      %32 = vector.multi_reduction <add>, %31, %cst_12 [0] : vector<3x8x128xf32> to vector<8x128xf32>
      %33 = tpu.reciprocal %32 {approx = true} : vector<8x128xf32> -> vector<8x128xf32>
      %34 = math.log %32 : vector<8x128xf32>
      %35 = tpu.iota {dimensions = array<i32: 0>} : vector<3x8x128xi32>
      %36 = vector.broadcast %8 : vector<1x8x128xi32> to vector<3x8x128xi32>
      %37 = arith.cmpi eq, %36, %35 : vector<3x8x128xi32>
      %38 = arith.extui %37 : vector<3x8x128xi1> to vector<3x8x128xi32>
      %39 = arith.sitofp %38 : vector<3x8x128xi32> to vector<3x8x128xf32>
      %40 = arith.mulf %33, %26 : vector<8x128xf32>
      %41 = arith.mulf %34, %26 : vector<8x128xf32>
      %42 = vector.shape_cast %26 : vector<8x128xf32> to vector<1x8x128xf32>
      %43 = vector.broadcast %42 : vector<1x8x128xf32> to vector<3x8x128xf32>
      %44 = arith.mulf %39, %43 : vector<3x8x128xf32>
      %45 = vector.shape_cast %40 : vector<8x128xf32> to vector<1x8x128xf32>
      %46 = vector.broadcast %45 : vector<1x8x128xf32> to vector<3x8x128xf32>
      %47 = arith.mulf %31, %46 : vector<3x8x128xf32>
      %48 = arith.mulf %44, %30 : vector<3x8x128xf32>
      %cst_13 = arith.constant dense<0.000000e+00> : vector<8x128xf32>
      %49 = vector.multi_reduction <add>, %48, %cst_13 [0] : vector<3x8x128xf32> to vector<8x128xf32>
      %50 = arith.subf %41, %49 : vector<8x128xf32>
      %c0_14 = arith.constant 0 : index
      %c0_15 = arith.constant 0 : index
      %c0_16 = arith.constant 0 : index
      %c0_17 = arith.constant 0 : index
      %51 = vector.load %arg5[%c0_14, %c0_15, %c0_16, %c0_17] : memref<1x3x8x128xf32, #tpu.memory_space<vmem>>, vector<1x3x8x128xf32>
      %52 = vector.shape_cast %51 : vector<1x3x8x128xf32> to vector<3x8x128xf32>
      %53 = arith.mulf %47, %44 : vector<3x8x128xf32>
      %54 = vector.shape_cast %53 : vector<3x8x128xf32> to vector<3x1x8x128xf32>
      %cst_18 = arith.constant dense<0.000000e+00> : vector<3x8x128xf32>
      %55 = vector.multi_reduction <add>, %54, %cst_18 [1] : vector<3x1x8x128xf32> to vector<3x8x128xf32>
      %56 = arith.addf %52, %55 : vector<3x8x128xf32>
      %c0_19 = arith.constant 0 : index
      %c0_20 = arith.constant 0 : index
      %c0_21 = arith.constant 0 : index
      %c0_22 = arith.constant 0 : index
      %57 = vector.load %arg5[%c0_19, %c0_20, %c0_21, %c0_22] : memref<1x3x8x128xf32, #tpu.memory_space<vmem>>, vector<1x3x8x128xf32>
      %58 = vector.shape_cast %57 : vector<1x3x8x128xf32> to vector<3x8x128xf32>
      %59 = vector.shape_cast %56 : vector<3x8x128xf32> to vector<1x3x8x128xf32>
      tpu.vector_store %arg5[%c0_19, %c0_20, %c0_21, %c0_22], %59 {strides = array<i32>} : memref<1x3x8x128xf32, #tpu.memory_space<vmem>>, vector<1x3x8x128xf32>,
      %c0_23 = arith.constant 0 : index
      %c0_24 = arith.constant 0 : index
      %c0_25 = arith.constant 0 : index
      %c0_26 = arith.constant 0 : index
      %60 = vector.load %arg6[%c0_23, %c0_24, %c0_25, %c0_26] : memref<1x3x8x128xf32, #tpu.memory_space<vmem>>, vector<1x3x8x128xf32>
      %61 = vector.shape_cast %60 : vector<1x3x8x128xf32> to vector<3x8x128xf32>
      %62 = vector.shape_cast %47 : vector<3x8x128xf32> to vector<3x1x8x128xf32>
      %cst_27 = arith.constant dense<0.000000e+00> : vector<3x8x128xf32>
      %63 = vector.multi_reduction <add>, %62, %cst_27 [1] : vector<3x1x8x128xf32> to vector<3x8x128xf32>
      %64 = arith.addf %61, %63 : vector<3x8x128xf32>
      %c0_28 = arith.constant 0 : index
      %c0_29 = arith.constant 0 : index
      %c0_30 = arith.constant 0 : index
      %c0_31 = arith.constant 0 : index
      %65 = vector.load %arg6[%c0_28, %c0_29, %c0_30, %c0_31] : memref<1x3x8x128xf32, #tpu.memory_space<vmem>>, vector<1x3x8x128xf32>
      %66 = vector.shape_cast %65 : vector<1x3x8x128xf32> to vector<3x8x128xf32>
      %67 = vector.shape_cast %64 : vector<3x8x128xf32> to vector<1x3x8x128xf32>
      tpu.vector_store %arg6[%c0_28, %c0_29, %c0_30, %c0_31], %67 {strides = array<i32>} : memref<1x3x8x128xf32, #tpu.memory_space<vmem>>, vector<1x3x8x128xf32>,
      %c0_32 = arith.constant 0 : index
      %c0_33 = arith.constant 0 : index
      %c0_34 = arith.constant 0 : index
      %c0_35 = arith.constant 0 : index
      %68 = vector.load %arg7[%c0_32, %c0_33, %c0_34, %c0_35] : memref<1x3x8x128xf32, #tpu.memory_space<vmem>>, vector<1x3x8x128xf32>
      %69 = vector.shape_cast %68 : vector<1x3x8x128xf32> to vector<3x8x128xf32>
      %70 = vector.shape_cast %44 : vector<3x8x128xf32> to vector<3x1x8x128xf32>
      %cst_36 = arith.constant dense<0.000000e+00> : vector<3x8x128xf32>
      %71 = vector.multi_reduction <add>, %70, %cst_36 [1] : vector<3x1x8x128xf32> to vector<3x8x128xf32>
      %72 = arith.addf %69, %71 : vector<3x8x128xf32>
      %c0_37 = arith.constant 0 : index
      %c0_38 = arith.constant 0 : index
      %c0_39 = arith.constant 0 : index
      %c0_40 = arith.constant 0 : index
      %73 = vector.load %arg7[%c0_37, %c0_38, %c0_39, %c0_40] : memref<1x3x8x128xf32, #tpu.memory_space<vmem>>, vector<1x3x8x128xf32>
      %74 = vector.shape_cast %73 : vector<1x3x8x128xf32> to vector<3x8x128xf32>
      %75 = vector.shape_cast %72 : vector<3x8x128xf32> to vector<1x3x8x128xf32>
      tpu.vector_store %arg7[%c0_37, %c0_38, %c0_39, %c0_40], %75 {strides = array<i32>} : memref<1x3x8x128xf32, #tpu.memory_space<vmem>>, vector<1x3x8x128xf32>,
      %c0_41 = arith.constant 0 : index
      %c0_42 = arith.constant 0 : index
      %c0_43 = arith.constant 0 : index
      %c0_44 = arith.constant 0 : index
      %76 = vector.load %arg8[%c0_41, %c0_42, %c0_43, %c0_44] : memref<1x1x8x128xf32, #tpu.memory_space<vmem>>, vector<1x1x8x128xf32>
      %77 = vector.shape_cast %76 : vector<1x1x8x128xf32> to vector<1x8x128xf32>
      %78 = vector.shape_cast %50 : vector<8x128xf32> to vector<1x8x128xf32>
      %cst_45 = arith.constant dense<0.000000e+00> : vector<8x128xf32>
      %79 = vector.multi_reduction <add>, %78, %cst_45 [0] : vector<1x8x128xf32> to vector<8x128xf32>
      %80 = vector.shape_cast %79 : vector<8x128xf32> to vector<1x8x128xf32>
      %81 = arith.addf %77, %80 : vector<1x8x128xf32>
      %c0_46 = arith.constant 0 : index
      %c0_47 = arith.constant 0 : index
      %c0_48 = arith.constant 0 : index
      %c0_49 = arith.constant 0 : index
      %82 = vector.load %arg8[%c0_46, %c0_47, %c0_48, %c0_49] : memref<1x1x8x128xf32, #tpu.memory_space<vmem>>, vector<1x1x8x128xf32>
      %83 = vector.shape_cast %82 : vector<1x1x8x128xf32> to vector<1x8x128xf32>
      %84 = vector.shape_cast %81 : vector<1x8x128xf32> to vector<1x1x8x128xf32>
      tpu.vector_store %arg8[%c0_46, %c0_47, %c0_48, %c0_49], %84 {strides = array<i32>} : memref<1x1x8x128xf32, #tpu.memory_space<vmem>>, vector<1x1x8x128xf32>,
    } else {
    }
    return
  }
  func.func @transform_0(%arg0: i32, %arg1: i32, %arg2: i32) -> (i32, i32, i32, i32) {
    %c1_i32 = arith.constant 1 : i32
    %0 = arith.muli %arg0, %c1_i32 : i32
    %1 = arith.addi %0, %arg2 : i32
    %c0_i32 = arith.constant 0 : i32
    %c0_i32_0 = arith.constant 0 : i32
    %c0_i32_1 = arith.constant 0 : i32
    return %arg1, %c0_i32, %1, %c0_i32_0 : i32, i32, i32, i32
  }
  func.func @transform_1(%arg0: i32, %arg1: i32, %arg2: i32) -> (i32, i32, i32, i32) {
    %c1_i32 = arith.constant 1 : i32
    %0 = arith.muli %arg0, %c1_i32 : i32
    %1 = arith.addi %0, %arg2 : i32
    %c0_i32 = arith.constant 0 : i32
    %c0_i32_0 = arith.constant 0 : i32
    %c0_i32_1 = arith.constant 0 : i32
    return %arg1, %c0_i32, %1, %c0_i32_0 : i32, i32, i32, i32
  }
  func.func @transform_2(%arg0: i32, %arg1: i32, %arg2: i32) -> (i32, i32, i32, i32) {
    %c2_i32 = arith.constant 2 : i32
    %0 = arith.muli %arg0, %c2_i32 : i32
    %1 = arith.addi %0, %arg1 : i32
    %c0_i32 = arith.constant 0 : i32
    %c0_i32_0 = arith.constant 0 : i32
    %c0_i32_1 = arith.constant 0 : i32
    %c0_i32_2 = arith.constant 0 : i32
    return %1, %c0_i32, %c0_i32_0, %c0_i32_1 : i32, i32, i32, i32
  }
  func.func @transform_3(%arg0: i32, %arg1: i32, %arg2: i32) -> (i32, i32, i32, i32) {
    %c2_i32 = arith.constant 2 : i32
    %0 = arith.muli %arg0, %c2_i32 : i32
    %1 = arith.addi %0, %arg1 : i32
    %c0_i32 = arith.constant 0 : i32
    %c0_i32_0 = arith.constant 0 : i32
    %c0_i32_1 = arith.constant 0 : i32
    %c0_i32_2 = arith.constant 0 : i32
    return %1, %c0_i32, %c0_i32_0, %c0_i32_1 : i32, i32, i32, i32
  }
  func.func @transform_4(%arg0: i32, %arg1: i32, %arg2: i32) -> (i32, i32, i32, i32) {
    %c2_i32 = arith.constant 2 : i32
    %0 = arith.muli %arg0, %c2_i32 : i32
    %1 = arith.addi %0, %arg1 : i32
    %c0_i32 = arith.constant 0 : i32
    %c0_i32_0 = arith.constant 0 : i32
    %c0_i32_1 = arith.constant 0 : i32
    %c0_i32_2 = arith.constant 0 : i32
    return %1, %c0_i32, %c0_i32_0, %c0_i32_1 : i32, i32, i32, i32
  }
  func.func @transform_5(%arg0: i32, %arg1: i32, %arg2: i32) -> (i32, i32, i32, i32) {
    %c2_i32 = arith.constant 2 : i32
    %0 = arith.muli %arg0, %c2_i32 : i32
    %1 = arith.addi %0, %arg1 : i32
    %c0_i32 = arith.constant 0 : i32
    %c0_i32_0 = arith.constant 0 : i32
    %c0_i32_1 = arith.constant 0 : i32
    %c0_i32_2 = arith.constant 0 : i32
    return %1, %c0_i32, %c0_i32_0, %c0_i32_1 : i32, i32, i32, i32
  }
}

</mosaic_0001>

<bundles_post_ra>
// kernel: combined_loss.1
= control target key start
LH: loop header
LB: loop body
LE: loop exit
PB: predicated region body
PF: predicated region fallthrough
CT: control target
= control target key end

     0   :  { %s890_s18 = smov 0   ;;  %s892_s19 = smov 0   ;;  %s949_s0 = inlined_call_operand.vmem [shape: f32[2,3,8,128], index: 0, kind: input, shape index: {}]   ;;  %s950_s1 = inlined_call_operand.vmem [shape: s32[2,1,8,128], index: 1, kind: input, shape index: {}]   ;;  %s951_s2 = inlined_call_operand.vmem [shape: f32[2,3,8,128], index: 2, kind: output, shape index: {0}]   ;;  %s952_s3 = inlined_call_operand.vmem [shape: f32[2,3,8,128], index: 3, kind: output, shape index: {1}]   ;;  %s953_s4 = inlined_call_operand.vmem [shape: f32[2,3,8,128], index: 4, kind: output, shape index: {2}]   ;;  %s954_s5 = inlined_call_operand.vmem [shape: f32[2,1,8,128], index: 5, kind: output, shape index: {3}]  }
   0x1   :  { %s894_s20 = smov 0  }
   0x2 LB: > { %s31_s21 = sadd.s32 1, %s853_s19  ;;  %p783_p0 = scmp.ge.s32.totalorder %s857_s20, 1  ;;  %s857_s20 = sphi %s894_s20, %s16_s20   ;;  %s853_s19 = sphi %s892_s19, %s956_s19   ;;  %s849_s18 = sphi %s890_s18, %s955_s18  }
   0x3   : > { %p33_p1 = scmp.ge.s32.totalorder %s31_s21, 2  ;;  %p256_p2 = scmp.lt.s32.totalorder %s857_s20, 3 }
   0x5   : > { %s958_s21 = smov (%p33_p1, %s31_s21), 0  ;;  %p257_p3 = pnand %p783_p0, %p256_p2 }
   0x6   : > { %p319_p4 = scmp.lt.s32.totalorder (!%p257_p3), %s849_s18, 1  ;;  %v476_v0 = vlaneseq (!%p257_p3)  ;;  %v859_v6 = vmov (!%p257_p3), 0.0  }
   0x7   : > { %260 = sbr.rel (%p257_p3) target bundleno = 62 (0x3e), region = 28 }
   0x8   : > { %v477_v1 = vshrl.u32 (!%p257_p3), %v476_v0, 7  ;;  %v479_v2 = vand.u32 (!%p257_p3), 127, %v476_v0 }
   0xa   : > { %v481_v3 = vmul.u32 (!%p257_p3), 128, %v477_v1 }
   0xc   : > { %v484_v5 = vadd.s32 (!%p257_p3), %v481_v3, %v479_v2 }
   0xe   : > { %s960_s18 = smov (!%p319_p4, %s849_s18), 1  ;;  %vm485_vm3 = vcmp.lt.s32.totalorder %v484_v5, 256 }
   0xf   : > { %s911_s22 = smul.u32 24, %s960_s18  ;;  %s785_s23 = sshll.u32 %s960_s18, 3  ;;  %v793_v12 = vsel %vm485_vm3, 1.0, %v859_v6 }
  0x10   : > { %s335_s26 = scalar_lea.vmem %s950_s1, %s785_s23  ;;  %s369_s16 = scalar_lea.vmem %s954_s5, %s785_s23 }
  0x11   : > { %v390_v4 = vld [vmem:[%s335_s26] sm:$0xff]  ;;  %s326_s29 = scalar_lea.vmem %s949_s0, %s911_s22  ;;  %s361_s7 = scalar_lea.vmem %s953_s4, %s911_s22 }
  0x12   : > { %vm504_vm0 = vcmp.eq.s32.totalorder %v390_v4, 0  ;;  %vm505_vm1 = vcmp.eq.s32.totalorder %v390_v4, 1  ;;  %vm506_vm2 = vcmp.eq.s32.totalorder %v390_v4, 2  ;;  %v387_v10 = vld [vmem:[%s326_s29] sm:$0xff]  ;;  %v388_v11 = vld [vmem:[%s326_s29 + $0x8] sm:$0xff]  ;;  %v389_v13 = vld [vmem:[%s326_s29 + $0x10] sm:$0xff]  ;;  %s352_s10 = scalar_lea.vmem %s952_s3, %s911_s22  ;;  %s343_s13 = scalar_lea.vmem %s951_s2, %s911_s22 }
  0x13   : > { %v794_v7 = vsel %vm504_vm0, 1.0, %v859_v6  ;;  %v795_v8 = vsel %vm505_vm1, 1.0, %v859_v6  ;;  %v796_v9 = vsel %vm506_vm2, 1.0, %v859_v6  ;;  %v488_v14 = vmax.f32 %v387_v10, %v388_v11 }
  0x14   : > { %v515_v15 = vmul.f32 %v794_v7, %v793_v12  ;;  %v516_v16 = vmul.f32 %v795_v8, %v793_v12  ;;  %v517_v17 = vmul.f32 %v796_v9, %v793_v12 }
  0x15   : > { %v489_v18 = vmax.f32 %v488_v14, %v389_v13 }
  0x16   : > { %563 = vst [vmem:[%s361_s7] sm:$0xff] %v515_v15  ;;  %564 = vst [vmem:[%s361_s7 + $0x8] sm:$0xff] %v516_v16 }
  0x17   : > { %v490_v19 = vsub.f32 %v387_v10, %v489_v18  ;;  %v491_v20 = vsub.f32 %v388_v11, %v489_v18  ;;  %v492_v21 = vsub.f32 %v389_v13, %v489_v18  ;;  %565 = vst [vmem:[%s361_s7 + $0x10] sm:$0xff] %v517_v17 }
  0x19   : > { %v493_v22 = vmul.f32 1.442695, %v490_v19  ;;  %v495_v23 = vmul.f32 1.442695, %v491_v20  ;;  %v497_v24 = vmul.f32 1.442695, %v492_v21  ;;  %v521_v30 = vmul.f32 %v515_v15, %v490_v19 }
  0x1a   : > { %v522_v31 = vmul.f32 %v516_v16, %v491_v20  ;;  %v523_v32 = vmul.f32 %v517_v17, %v492_v21 }
  0x1b   : > { %825 = vpow2.f32 %v493_v22 }
  0x1c   : > { %827 = vpow2.f32 %v495_v23  ;;  %v524_v33 = vadd.f32 %v522_v31, %v521_v30 }
  0x1d   : > { %829 = vpow2.f32 %v497_v24 }
  0x1e   : > { %v525_v38 = vadd.f32 %v524_v33, %v523_v32 }
  0x25   : > { %v826_v25 = vpop.eup %825 }
  0x26   : > { %v828_v26 = vpop.eup %827 }
  0x27   : > { %v830_v27 = vpop.eup %829  ;;  %v499_v28 = vadd.f32 %v828_v26, %v826_v25 }
  0x29   : > { %v500_v29 = vadd.f32 %v830_v27, %v499_v28 }
  0x2b   : > { %831 = vrcp.f32 %v500_v29 }
  0x2c   : > { %833 = vlog2.f32 %v500_v29 }
  0x35   : > { %v832_v34 = vpop.eup %831 }
  0x36   : > { %v834_v35 = vpop.eup %833  ;;  %v513_v36 = vmul.f32 %v832_v34, %v793_v12 }
  0x37   : > { %v503_v37 = vmul.f32 0.6931472, %v834_v35 }
  0x38   : > { %v518_v39 = vmul.f32 %v826_v25, %v513_v36  ;;  %v519_v40 = vmul.f32 %v828_v26, %v513_v36  ;;  %v520_v41 = vmul.f32 %v830_v27, %v513_v36 }
  0x39   : > { %v514_v42 = vmul.f32 %v793_v12, %v503_v37 }
  0x3a   : > { %v530_v43 = vmul.f32 %v518_v39, %v515_v15  ;;  %v531_v44 = vmul.f32 %v519_v40, %v516_v16  ;;  %v532_v45 = vmul.f32 %v520_v41, %v517_v17  ;;  %551 = vst [vmem:[%s352_s10] sm:$0xff] %v518_v39  ;;  %552 = vst [vmem:[%s352_s10 + $0x8] sm:$0xff] %v519_v40 }
  0x3b   : > { %v526_v46 = vsub.f32 %v514_v42, %v525_v38  ;;  %553 = vst [vmem:[%s352_s10 + $0x10] sm:$0xff] %v520_v41 }
  0x3c   : > { %539 = vst [vmem:[%s343_s13] sm:$0xff] %v530_v43  ;;  %540 = vst [vmem:[%s343_s13 + $0x8] sm:$0xff] %v531_v44 }
  0x3d   : > { %541 = vst [vmem:[%s343_s13 + $0x10] sm:$0xff] %v532_v45  ;;  %569 = vst [vmem:[%s369_s16] sm:$0xff] %v526_v46 }
  0x3e PF: > { %s16_s20 = sadd.s32 1, %s857_s20   ;;  %s955_s18 = smov %s853_s19 }
  0x3f   : > { %p13_p5 = scmp.ge.s32.totalorder %s16_s20, 4   ;;  %s956_s19 = smov %s958_s21 }
  0x41   :  { %15 = sbr.rel (!%p13_p5) target bundleno = 2 (0x2), region = 109 }

</bundles_post_ra>
